<compile_context>
chip_gen: v5e
topology: v5e:2x2
jax: 0.10.0
libtpu: 0.0.40
codegen_flags: <defaults>
</compile_context>

<pallas_src>
import jax
import jax.numpy as jnp
from jax.experimental import pallas as pl
from jax.experimental.pallas import tpu as pltpu

TAG_PAD = 128  # lane-dense padded tag dimension (full vreg lane width)


def lstm_tagger_kernel(ids_ref, xg_ref, whh_ref, wout_ref, bout_ref, out_ref):
    """LSTM recurrence + tag head + log_softmax, everything VMEM-resident.

    ids_ref  : VMEM (seq, 1) int32      -- token ids (clipped in wrapper)
    xg_ref   : VMEM (vocab, 4H) f32     -- pre-projected emb@w_ih.T + bias,
                                           g-gate quarter pre-scaled by 2
    whh_ref  : VMEM (H, 4H) f32         -- hidden->gates weight (transposed),
                                           g-gate quarter pre-scaled by 2
    wout_ref : VMEM (H, TAG_PAD) f32    -- tag head weight, zero-padded lanes
    bout_ref : VMEM (1, TAG_PAD) f32    -- tag head bias, -1e30 in pad lanes
    out_ref  : VMEM (seq, TAG_PAD) f32  -- lane-dense log-prob output
    """
    seq = out_ref.shape[0]
    vocab = xg_ref.shape[0]
    H = whh_ref.shape[0]

    # ---- fused gather + input projection as ONE MXU matmul ----
    # one-hot(ids) @ xg_table  -> (seq, 4H) pre-activations (bias included,
    # since every row of xg_table already carries b_ih + b_hh).
    lane_iota = jax.lax.broadcasted_iota(jnp.int32, (seq, vocab), 1)
    onehot = (ids_ref[...] == lane_iota).astype(jnp.float32)      # (seq, vocab)
    xg = jnp.dot(onehot, xg_ref[...],
                 preferred_element_type=jnp.float32)              # (seq, 4H)

    whh = whh_ref[...]                                            # (H, 4H)

    # ---- serial recurrence, fully unrolled, state carried in vregs ----
    h = jnp.zeros((1, H), jnp.float32)
    c = jnp.zeros((1, H), jnp.float32)
    hs = []
    for t in range(seq):
        gates = xg[t:t + 1, :] + jnp.dot(
            h, whh, preferred_element_type=jnp.float32)           # (1, 4H)
        sg = jax.nn.sigmoid(gates)        # single full-width EUP pass
        i_g = sg[:, 0 * H:1 * H]
        f_g = sg[:, 1 * H:2 * H]
        # g columns were pre-scaled by 2 -> tanh(g) = 2*sigmoid(2g) - 1,
        # so the g-gate reuses the sigmoid above instead of a second EUP tanh.
        g_g = 2.0 * sg[:, 2 * H:3 * H] - 1.0
        o_g = sg[:, 3 * H:4 * H]
        c = f_g * c + i_g * g_g
        h = o_g * jnp.tanh(c)
        hs.append(h)

    hs_all = jnp.concatenate(hs, axis=0)                          # (seq, H)

    # ---- tag head + log_softmax on the whole block, one lane-dense store ----
    tag = (jnp.dot(hs_all, wout_ref[...], preferred_element_type=jnp.float32)
           + bout_ref[...])                                       # (seq, TAG_PAD)
    m = jnp.max(tag, axis=-1, keepdims=True)
    lse = m + jnp.log(jnp.sum(jnp.exp(tag - m), axis=-1, keepdims=True))
    out_ref[...] = tag - lse


def lstm_tagger_forward(sentence, emb_table, w_ih, w_hh, b_ih, b_hh,
                        w_out, b_out):
    seq = sentence.shape[0]
    vocab, E = emb_table.shape
    H = w_hh.shape[1]
    T = w_out.shape[0]

    # ---- weight-only preprocessing (done once per parameter set) ----
    # Pre-projected embedding table: (vocab, 4H) = emb @ w_ih.T + (b_ih+b_hh).
    xg_table = (emb_table.astype(jnp.float32)
                @ w_ih.T.astype(jnp.float32)
                + (b_ih + b_hh).astype(jnp.float32)[None, :])     # (vocab, 4H)
    whh_t = w_hh.T.astype(jnp.float32)                            # (H, 4H)
    # Fold a factor of 2 into the g-gate quarter so the kernel can use
    # tanh(g) = 2*sigmoid(2g) - 1 from its single full-width sigmoid.
    xg_table = xg_table.at[:, 2 * H:3 * H].multiply(2.0)
    whh_t = whh_t.at[:, 2 * H:3 * H].multiply(2.0)

    # Lane-dense tag head: pad the tag dim to 128.  Padded lanes get a huge
    # negative bias so they contribute nothing to the softmax (f32 only).
    wout_p = jnp.zeros((H, TAG_PAD), jnp.float32).at[:, :T].set(
        w_out.T.astype(jnp.float32))
    bout_p = jnp.full((1, TAG_PAD), -1e30, jnp.float32).at[:, :T].set(
        b_out.astype(jnp.float32))

    # Bounds-safe ids as a (seq, 1) int32 column (drives the one-hot gather).
    ids = jnp.clip(sentence.astype(jnp.int32), 0, vocab - 1).reshape(seq, 1)

    out_padded = pl.pallas_call(
        lstm_tagger_kernel,
        out_shape=jax.ShapeDtypeStruct((seq, TAG_PAD), jnp.float32),
        grid=(1,),
        in_specs=[
            pl.BlockSpec((seq, 1), lambda i: (0, 0)),
            pl.BlockSpec((vocab, 4 * H), lambda i: (0, 0)),
            pl.BlockSpec((H, 4 * H), lambda i: (0, 0)),
            pl.BlockSpec((H, TAG_PAD), lambda i: (0, 0)),
            pl.BlockSpec((1, TAG_PAD), lambda i: (0, 0)),
        ],
        out_specs=pl.BlockSpec((seq, TAG_PAD), lambda i: (0, 0)),
        compiler_params=pltpu.CompilerParams(
            dimension_semantics=("arbitrary",)),
    )(ids, xg_table, whh_t, wout_p, bout_p)

    return out_padded[:, :T]


def lstm_tagger_ref(sentence, emb_table, w_ih, w_hh, b_ih, b_hh, w_out, b_out):
    """Pure-JAX reference matching torch.nn.LSTM semantics (gate order ifgo)."""
    embeds = emb_table[sentence]
    H = w_hh.shape[1]
    h = jnp.zeros((1, H), jnp.float32)
    c = jnp.zeros((1, H), jnp.float32)
    outs = []
    for t in range(embeds.shape[0]):
        x_t = embeds[t:t + 1]
        gates = x_t @ w_ih.T + h @ w_hh.T + b_ih + b_hh
        i_g = jax.nn.sigmoid(gates[:, 0 * H:1 * H])
        f_g = jax.nn.sigmoid(gates[:, 1 * H:2 * H])
        g_g = jnp.tanh(gates[:, 2 * H:3 * H])
        o_g = jax.nn.sigmoid(gates[:, 3 * H:4 * H])
        c = f_g * c + i_g * g_g
        h = o_g * jnp.tanh(c)
        outs.append(h)
    lstm_out = jnp.concatenate(outs, axis=0)
    tag_space = lstm_out @ w_out.T + b_out
    return jax.nn.log_softmax(tag_space, axis=1)


if __name__ == "__main__":
    vocab_size = 20
    embedding_dim = 32
    hidden_dim = 32
    tagset_size = 8
    seq_len = 8

    key = jax.random.PRNGKey(0)
    ks = jax.random.split(key, 8)

    emb_table = jax.random.normal(ks[0], (vocab_size, embedding_dim),
                                  jnp.float32) * 0.5
    w_ih = jax.random.normal(ks[1], (4 * hidden_dim, embedding_dim),
                             jnp.float32) * 0.1
    w_hh = jax.random.normal(ks[2], (4 * hidden_dim, hidden_dim),
                             jnp.float32) * 0.1
    b_ih = jax.random.normal(ks[3], (4 * hidden_dim,), jnp.float32) * 0.1
    b_hh = jax.random.normal(ks[4], (4 * hidden_dim,), jnp.float32) * 0.1
    w_out = jax.random.normal(ks[5], (tagset_size, hidden_dim),
                              jnp.float32) * 0.1
    b_out = jax.random.normal(ks[6], (tagset_size,), jnp.float32) * 0.1

    sentence = jax.random.randint(ks[7], (seq_len,), 0, vocab_size,
                                  dtype=jnp.int32)

    out = lstm_tagger_forward(sentence, emb_table, w_ih, w_hh, b_ih, b_hh,
                              w_out, b_out)
    out = jax.block_until_ready(out)

    ref = lstm_tagger_ref(sentence, emb_table, w_ih, w_hh, b_ih, b_hh,
                          w_out, b_out)
    assert out.shape == (seq_len, tagset_size)
    assert jnp.allclose(out, ref, atol=1e-4, rtol=1e-4), (
        "mismatch vs reference")

    print("KERNEL_OK")
</pallas_src>

<mosaic_0001>
module attributes {stable_mosaic.version = 11 : i64} {
  func.func @lstm_tagger_kernel(%arg0: i32, %arg1: memref<8x1xi32, #tpu.memory_space<vmem>>, %arg2: memref<20x128xf32, #tpu.memory_space<vmem>>, %arg3: memref<32x128xf32, #tpu.memory_space<vmem>>, %arg4: memref<32x128xf32, #tpu.memory_space<vmem>>, %arg5: memref<1x128xf32, #tpu.memory_space<vmem>>, %arg6: memref<8x128xf32, #tpu.memory_space<vmem>>) attributes {dimension_semantics = [#tpu.dimension_semantics<arbitrary>], iteration_bounds = array<i64: 1>, scalar_prefetch = 0 : i64, scratch_operands = 0 : i64, tpu.core_type = #tpu.core_type<tc>, window_params = [{pipeline_mode = #tpu.pipeline_mode<synchronous>, transform_indices = @transform_0, window_bounds = array<i64: 8, 1>}, {pipeline_mode = #tpu.pipeline_mode<synchronous>, transform_indices = @transform_1, window_bounds = array<i64: 20, 128>}, {pipeline_mode = #tpu.pipeline_mode<synchronous>, transform_indices = @transform_2, window_bounds = array<i64: 32, 128>}, {pipeline_mode = #tpu.pipeline_mode<synchronous>, transform_indices = @transform_3, window_bounds = array<i64: 32, 128>}, {pipeline_mode = #tpu.pipeline_mode<synchronous>, transform_indices = @transform_4, window_bounds = array<i64: 1, 128>}, {pipeline_mode = #tpu.pipeline_mode<synchronous>, transform_indices = @transform_5, window_bounds = array<i64: 8, 128>}]} {
    %0 = tpu.iota {dimensions = array<i32: 1>} : vector<8x20xi32>
    %c0 = arith.constant 0 : index
    %c0_0 = arith.constant 0 : index
    %1 = vector.load %arg1[%c0, %c0_0] : memref<8x1xi32, #tpu.memory_space<vmem>>, vector<8x1xi32>
    %2 = vector.broadcast %1 : vector<8x1xi32> to vector<8x20xi32>
    %3 = arith.cmpi eq, %2, %0 : vector<8x20xi32>
    %4 = arith.extui %3 : vector<8x20xi1> to vector<8x20xi32>
    %5 = arith.sitofp %4 : vector<8x20xi32> to vector<8x20xf32>
    %c0_1 = arith.constant 0 : index
    %c0_2 = arith.constant 0 : index
    %6 = vector.load %arg2[%c0_1, %c0_2] : memref<20x128xf32, #tpu.memory_space<vmem>>, vector<20x128xf32>
    %cst = arith.constant dense<0.000000e+00> : vector<8x128xf32>
    %7 = tpu.matmul %5, %6, %cst {dimension_numbers = #tpu.dot_dimension_numbers<[1], [0], [0], [1], [0, 0, 1, 1], [], []>} : vector<8x20xf32>, vector<20x128xf32>, vector<8x128xf32> -> vector<8x128xf32>
    %c0_3 = arith.constant 0 : index
    %c0_4 = arith.constant 0 : index
    %8 = vector.load %arg3[%c0_3, %c0_4] : memref<32x128xf32, #tpu.memory_space<vmem>>, vector<32x128xf32>
    %cst_5 = arith.constant 0.000000e+00 : f32
    %9 = vector.broadcast %cst_5 : f32 to vector<1x32xf32>
    %cst_6 = arith.constant 0.000000e+00 : f32
    %10 = vector.broadcast %cst_6 : f32 to vector<1x32xf32>
    %11 = vector.extract_strided_slice %7 {offsets = [0, 0], sizes = [1, 128], strides = [1, 1]} : vector<8x128xf32> to vector<1x128xf32>
    %cst_7 = arith.constant dense<0.000000e+00> : vector<1x128xf32>
    %12 = tpu.matmul %9, %8, %cst_7 {dimension_numbers = #tpu.dot_dimension_numbers<[1], [0], [0], [1], [0, 0, 1, 1], [], []>} : vector<1x32xf32>, vector<32x128xf32>, vector<1x128xf32> -> vector<1x128xf32>
    %13 = arith.addf %11, %12 : vector<1x128xf32>
    %14 = arith.negf %13 : vector<1x128xf32>
    %15 = math.exp %14 : vector<1x128xf32>
    %cst_8 = arith.constant 1.000000e+00 : f32
    %16 = vector.broadcast %cst_8 : f32 to vector<1x128xf32>
    %17 = arith.addf %16, %15 : vector<1x128xf32>
    %18 = arith.divf %16, %17 : vector<1x128xf32>
    %19 = vector.extract_strided_slice %18 {offsets = [0, 0], sizes = [1, 32], strides = [1, 1]} : vector<1x128xf32> to vector<1x32xf32>
    %20 = vector.extract_strided_slice %18 {offsets = [0, 32], sizes = [1, 32], strides = [1, 1]} : vector<1x128xf32> to vector<1x32xf32>
    %21 = vector.extract_strided_slice %18 {offsets = [0, 64], sizes = [1, 32], strides = [1, 1]} : vector<1x128xf32> to vector<1x32xf32>
    %cst_9 = arith.constant 2.000000e+00 : f32
    %22 = vector.broadcast %cst_9 : f32 to vector<1x32xf32>
    %23 = arith.mulf %22, %21 : vector<1x32xf32>
    %cst_10 = arith.constant 1.000000e+00 : f32
    %24 = vector.broadcast %cst_10 : f32 to vector<1x32xf32>
    %25 = arith.subf %23, %24 : vector<1x32xf32>
    %26 = vector.extract_strided_slice %18 {offsets = [0, 96], sizes = [1, 32], strides = [1, 1]} : vector<1x128xf32> to vector<1x32xf32>
    %27 = arith.mulf %20, %10 : vector<1x32xf32>
    %28 = arith.mulf %19, %25 : vector<1x32xf32>
    %29 = arith.addf %27, %28 : vector<1x32xf32>
    %30 = math.tanh %29 : vector<1x32xf32>
    %31 = arith.mulf %26, %30 : vector<1x32xf32>
    %32 = vector.extract_strided_slice %7 {offsets = [1, 0], sizes = [1, 128], strides = [1, 1]} : vector<8x128xf32> to vector<1x128xf32>
    %cst_11 = arith.constant dense<0.000000e+00> : vector<1x128xf32>
    %33 = tpu.matmul %31, %8, %cst_11 {dimension_numbers = #tpu.dot_dimension_numbers<[1], [0], [0], [1], [0, 0, 1, 1], [], []>} : vector<1x32xf32>, vector<32x128xf32>, vector<1x128xf32> -> vector<1x128xf32>
    %34 = arith.addf %32, %33 : vector<1x128xf32>
    %35 = arith.negf %34 : vector<1x128xf32>
    %36 = math.exp %35 : vector<1x128xf32>
    %cst_12 = arith.constant 1.000000e+00 : f32
    %37 = vector.broadcast %cst_12 : f32 to vector<1x128xf32>
    %38 = arith.addf %37, %36 : vector<1x128xf32>
    %39 = arith.divf %37, %38 : vector<1x128xf32>
    %40 = vector.extract_strided_slice %39 {offsets = [0, 0], sizes = [1, 32], strides = [1, 1]} : vector<1x128xf32> to vector<1x32xf32>
    %41 = vector.extract_strided_slice %39 {offsets = [0, 32], sizes = [1, 32], strides = [1, 1]} : vector<1x128xf32> to vector<1x32xf32>
    %42 = vector.extract_strided_slice %39 {offsets = [0, 64], sizes = [1, 32], strides = [1, 1]} : vector<1x128xf32> to vector<1x32xf32>
    %cst_13 = arith.constant 2.000000e+00 : f32
    %43 = vector.broadcast %cst_13 : f32 to vector<1x32xf32>
    %44 = arith.mulf %43, %42 : vector<1x32xf32>
    %cst_14 = arith.constant 1.000000e+00 : f32
    %45 = vector.broadcast %cst_14 : f32 to vector<1x32xf32>
    %46 = arith.subf %44, %45 : vector<1x32xf32>
    %47 = vector.extract_strided_slice %39 {offsets = [0, 96], sizes = [1, 32], strides = [1, 1]} : vector<1x128xf32> to vector<1x32xf32>
    %48 = arith.mulf %41, %29 : vector<1x32xf32>
    %49 = arith.mulf %40, %46 : vector<1x32xf32>
    %50 = arith.addf %48, %49 : vector<1x32xf32>
    %51 = math.tanh %50 : vector<1x32xf32>
    %52 = arith.mulf %47, %51 : vector<1x32xf32>
    %53 = vector.extract_strided_slice %7 {offsets = [2, 0], sizes = [1, 128], strides = [1, 1]} : vector<8x128xf32> to vector<1x128xf32>
    %cst_15 = arith.constant dense<0.000000e+00> : vector<1x128xf32>
    %54 = tpu.matmul %52, %8, %cst_15 {dimension_numbers = #tpu.dot_dimension_numbers<[1], [0], [0], [1], [0, 0, 1, 1], [], []>} : vector<1x32xf32>, vector<32x128xf32>, vector<1x128xf32> -> vector<1x128xf32>
    %55 = arith.addf %53, %54 : vector<1x128xf32>
    %56 = arith.negf %55 : vector<1x128xf32>
    %57 = math.exp %56 : vector<1x128xf32>
    %cst_16 = arith.constant 1.000000e+00 : f32
    %58 = vector.broadcast %cst_16 : f32 to vector<1x128xf32>
    %59 = arith.addf %58, %57 : vector<1x128xf32>
    %60 = arith.divf %58, %59 : vector<1x128xf32>
    %61 = vector.extract_strided_slice %60 {offsets = [0, 0], sizes = [1, 32], strides = [1, 1]} : vector<1x128xf32> to vector<1x32xf32>
    %62 = vector.extract_strided_slice %60 {offsets = [0, 32], sizes = [1, 32], strides = [1, 1]} : vector<1x128xf32> to vector<1x32xf32>
    %63 = vector.extract_strided_slice %60 {offsets = [0, 64], sizes = [1, 32], strides = [1, 1]} : vector<1x128xf32> to vector<1x32xf32>
    %cst_17 = arith.constant 2.000000e+00 : f32
    %64 = vector.broadcast %cst_17 : f32 to vector<1x32xf32>
    %65 = arith.mulf %64, %63 : vector<1x32xf32>
    %cst_18 = arith.constant 1.000000e+00 : f32
    %66 = vector.broadcast %cst_18 : f32 to vector<1x32xf32>
    %67 = arith.subf %65, %66 : vector<1x32xf32>
    %68 = vector.extract_strided_slice %60 {offsets = [0, 96], sizes = [1, 32], strides = [1, 1]} : vector<1x128xf32> to vector<1x32xf32>
    %69 = arith.mulf %62, %50 : vector<1x32xf32>
    %70 = arith.mulf %61, %67 : vector<1x32xf32>
    %71 = arith.addf %69, %70 : vector<1x32xf32>
    %72 = math.tanh %71 : vector<1x32xf32>
    %73 = arith.mulf %68, %72 : vector<1x32xf32>
    %74 = vector.extract_strided_slice %7 {offsets = [3, 0], sizes = [1, 128], strides = [1, 1]} : vector<8x128xf32> to vector<1x128xf32>
    %cst_19 = arith.constant dense<0.000000e+00> : vector<1x128xf32>
    %75 = tpu.matmul %73, %8, %cst_19 {dimension_numbers = #tpu.dot_dimension_numbers<[1], [0], [0], [1], [0, 0, 1, 1], [], []>} : vector<1x32xf32>, vector<32x128xf32>, vector<1x128xf32> -> vector<1x128xf32>
    %76 = arith.addf %74, %75 : vector<1x128xf32>
    %77 = arith.negf %76 : vector<1x128xf32>
    %78 = math.exp %77 : vector<1x128xf32>
    %cst_20 = arith.constant 1.000000e+00 : f32
    %79 = vector.broadcast %cst_20 : f32 to vector<1x128xf32>
    %80 = arith.addf %79, %78 : vector<1x128xf32>
    %81 = arith.divf %79, %80 : vector<1x128xf32>
    %82 = vector.extract_strided_slice %81 {offsets = [0, 0], sizes = [1, 32], strides = [1, 1]} : vector<1x128xf32> to vector<1x32xf32>
    %83 = vector.extract_strided_slice %81 {offsets = [0, 32], sizes = [1, 32], strides = [1, 1]} : vector<1x128xf32> to vector<1x32xf32>
    %84 = vector.extract_strided_slice %81 {offsets = [0, 64], sizes = [1, 32], strides = [1, 1]} : vector<1x128xf32> to vector<1x32xf32>
    %cst_21 = arith.constant 2.000000e+00 : f32
    %85 = vector.broadcast %cst_21 : f32 to vector<1x32xf32>
    %86 = arith.mulf %85, %84 : vector<1x32xf32>
    %cst_22 = arith.constant 1.000000e+00 : f32
    %87 = vector.broadcast %cst_22 : f32 to vector<1x32xf32>
    %88 = arith.subf %86, %87 : vector<1x32xf32>
    %89 = vector.extract_strided_slice %81 {offsets = [0, 96], sizes = [1, 32], strides = [1, 1]} : vector<1x128xf32> to vector<1x32xf32>
    %90 = arith.mulf %83, %71 : vector<1x32xf32>
    %91 = arith.mulf %82, %88 : vector<1x32xf32>
    %92 = arith.addf %90, %91 : vector<1x32xf32>
    %93 = math.tanh %92 : vector<1x32xf32>
    %94 = arith.mulf %89, %93 : vector<1x32xf32>
    %95 = vector.extract_strided_slice %7 {offsets = [4, 0], sizes = [1, 128], strides = [1, 1]} : vector<8x128xf32> to vector<1x128xf32>
    %cst_23 = arith.constant dense<0.000000e+00> : vector<1x128xf32>
    %96 = tpu.matmul %94, %8, %cst_23 {dimension_numbers = #tpu.dot_dimension_numbers<[1], [0], [0], [1], [0, 0, 1, 1], [], []>} : vector<1x32xf32>, vector<32x128xf32>, vector<1x128xf32> -> vector<1x128xf32>
    %97 = arith.addf %95, %96 : vector<1x128xf32>
    %98 = arith.negf %97 : vector<1x128xf32>
    %99 = math.exp %98 : vector<1x128xf32>
    %cst_24 = arith.constant 1.000000e+00 : f32
    %100 = vector.broadcast %cst_24 : f32 to vector<1x128xf32>
    %101 = arith.addf %100, %99 : vector<1x128xf32>
    %102 = arith.divf %100, %101 : vector<1x128xf32>
    %103 = vector.extract_strided_slice %102 {offsets = [0, 0], sizes = [1, 32], strides = [1, 1]} : vector<1x128xf32> to vector<1x32xf32>
    %104 = vector.extract_strided_slice %102 {offsets = [0, 32], sizes = [1, 32], strides = [1, 1]} : vector<1x128xf32> to vector<1x32xf32>
    %105 = vector.extract_strided_slice %102 {offsets = [0, 64], sizes = [1, 32], strides = [1, 1]} : vector<1x128xf32> to vector<1x32xf32>
    %cst_25 = arith.constant 2.000000e+00 : f32
    %106 = vector.broadcast %cst_25 : f32 to vector<1x32xf32>
    %107 = arith.mulf %106, %105 : vector<1x32xf32>
    %cst_26 = arith.constant 1.000000e+00 : f32
    %108 = vector.broadcast %cst_26 : f32 to vector<1x32xf32>
    %109 = arith.subf %107, %108 : vector<1x32xf32>
    %110 = vector.extract_strided_slice %102 {offsets = [0, 96], sizes = [1, 32], strides = [1, 1]} : vector<1x128xf32> to vector<1x32xf32>
    %111 = arith.mulf %104, %92 : vector<1x32xf32>
    %112 = arith.mulf %103, %109 : vector<1x32xf32>
    %113 = arith.addf %111, %112 : vector<1x32xf32>
    %114 = math.tanh %113 : vector<1x32xf32>
    %115 = arith.mulf %110, %114 : vector<1x32xf32>
    %116 = vector.extract_strided_slice %7 {offsets = [5, 0], sizes = [1, 128], strides = [1, 1]} : vector<8x128xf32> to vector<1x128xf32>
    %cst_27 = arith.constant dense<0.000000e+00> : vector<1x128xf32>
    %117 = tpu.matmul %115, %8, %cst_27 {dimension_numbers = #tpu.dot_dimension_numbers<[1], [0], [0], [1], [0, 0, 1, 1], [], []>} : vector<1x32xf32>, vector<32x128xf32>, vector<1x128xf32> -> vector<1x128xf32>
    %118 = arith.addf %116, %117 : vector<1x128xf32>
    %119 = arith.negf %118 : vector<1x128xf32>
    %120 = math.exp %119 : vector<1x128xf32>
    %cst_28 = arith.constant 1.000000e+00 : f32
    %121 = vector.broadcast %cst_28 : f32 to vector<1x128xf32>
    %122 = arith.addf %121, %120 : vector<1x128xf32>
    %123 = arith.divf %121, %122 : vector<1x128xf32>
    %124 = vector.extract_strided_slice %123 {offsets = [0, 0], sizes = [1, 32], strides = [1, 1]} : vector<1x128xf32> to vector<1x32xf32>
    %125 = vector.extract_strided_slice %123 {offsets = [0, 32], sizes = [1, 32], strides = [1, 1]} : vector<1x128xf32> to vector<1x32xf32>
    %126 = vector.extract_strided_slice %123 {offsets = [0, 64], sizes = [1, 32], strides = [1, 1]} : vector<1x128xf32> to vector<1x32xf32>
    %cst_29 = arith.constant 2.000000e+00 : f32
    %127 = vector.broadcast %cst_29 : f32 to vector<1x32xf32>
    %128 = arith.mulf %127, %126 : vector<1x32xf32>
    %cst_30 = arith.constant 1.000000e+00 : f32
    %129 = vector.broadcast %cst_30 : f32 to vector<1x32xf32>
    %130 = arith.subf %128, %129 : vector<1x32xf32>
    %131 = vector.extract_strided_slice %123 {offsets = [0, 96], sizes = [1, 32], strides = [1, 1]} : vector<1x128xf32> to vector<1x32xf32>
    %132 = arith.mulf %125, %113 : vector<1x32xf32>
    %133 = arith.mulf %124, %130 : vector<1x32xf32>
    %134 = arith.addf %132, %133 : vector<1x32xf32>
    %135 = math.tanh %134 : vector<1x32xf32>
    %136 = arith.mulf %131, %135 : vector<1x32xf32>
    %137 = vector.extract_strided_slice %7 {offsets = [6, 0], sizes = [1, 128], strides = [1, 1]} : vector<8x128xf32> to vector<1x128xf32>
    %cst_31 = arith.constant dense<0.000000e+00> : vector<1x128xf32>
    %138 = tpu.matmul %136, %8, %cst_31 {dimension_numbers = #tpu.dot_dimension_numbers<[1], [0], [0], [1], [0, 0, 1, 1], [], []>} : vector<1x32xf32>, vector<32x128xf32>, vector<1x128xf32> -> vector<1x128xf32>
    %139 = arith.addf %137, %138 : vector<1x128xf32>
    %140 = arith.negf %139 : vector<1x128xf32>
    %141 = math.exp %140 : vector<1x128xf32>
    %cst_32 = arith.constant 1.000000e+00 : f32
    %142 = vector.broadcast %cst_32 : f32 to vector<1x128xf32>
    %143 = arith.addf %142, %141 : vector<1x128xf32>
    %144 = arith.divf %142, %143 : vector<1x128xf32>
    %145 = vector.extract_strided_slice %144 {offsets = [0, 0], sizes = [1, 32], strides = [1, 1]} : vector<1x128xf32> to vector<1x32xf32>
    %146 = vector.extract_strided_slice %144 {offsets = [0, 32], sizes = [1, 32], strides = [1, 1]} : vector<1x128xf32> to vector<1x32xf32>
    %147 = vector.extract_strided_slice %144 {offsets = [0, 64], sizes = [1, 32], strides = [1, 1]} : vector<1x128xf32> to vector<1x32xf32>
    %cst_33 = arith.constant 2.000000e+00 : f32
    %148 = vector.broadcast %cst_33 : f32 to vector<1x32xf32>
    %149 = arith.mulf %148, %147 : vector<1x32xf32>
    %cst_34 = arith.constant 1.000000e+00 : f32
    %150 = vector.broadcast %cst_34 : f32 to vector<1x32xf32>
    %151 = arith.subf %149, %150 : vector<1x32xf32>
    %152 = vector.extract_strided_slice %144 {offsets = [0, 96], sizes = [1, 32], strides = [1, 1]} : vector<1x128xf32> to vector<1x32xf32>
    %153 = arith.mulf %146, %134 : vector<1x32xf32>
    %154 = arith.mulf %145, %151 : vector<1x32xf32>
    %155 = arith.addf %153, %154 : vector<1x32xf32>
    %156 = math.tanh %155 : vector<1x32xf32>
    %157 = arith.mulf %152, %156 : vector<1x32xf32>
    %158 = vector.extract_strided_slice %7 {offsets = [7, 0], sizes = [1, 128], strides = [1, 1]} : vector<8x128xf32> to vector<1x128xf32>
    %cst_35 = arith.constant dense<0.000000e+00> : vector<1x128xf32>
    %159 = tpu.matmul %157, %8, %cst_35 {dimension_numbers = #tpu.dot_dimension_numbers<[1], [0], [0], [1], [0, 0, 1, 1], [], []>} : vector<1x32xf32>, vector<32x128xf32>, vector<1x128xf32> -> vector<1x128xf32>
    %160 = arith.addf %158, %159 : vector<1x128xf32>
    %161 = arith.negf %160 : vector<1x128xf32>
    %162 = math.exp %161 : vector<1x128xf32>
    %cst_36 = arith.constant 1.000000e+00 : f32
    %163 = vector.broadcast %cst_36 : f32 to vector<1x128xf32>
    %164 = arith.addf %163, %162 : vector<1x128xf32>
    %165 = arith.divf %163, %164 : vector<1x128xf32>
    %166 = vector.extract_strided_slice %165 {offsets = [0, 0], sizes = [1, 32], strides = [1, 1]} : vector<1x128xf32> to vector<1x32xf32>
    %167 = vector.extract_strided_slice %165 {offsets = [0, 32], sizes = [1, 32], strides = [1, 1]} : vector<1x128xf32> to vector<1x32xf32>
    %168 = vector.extract_strided_slice %165 {offsets = [0, 64], sizes = [1, 32], strides = [1, 1]} : vector<1x128xf32> to vector<1x32xf32>
    %cst_37 = arith.constant 2.000000e+00 : f32
    %169 = vector.broadcast %cst_37 : f32 to vector<1x32xf32>
    %170 = arith.mulf %169, %168 : vector<1x32xf32>
    %cst_38 = arith.constant 1.000000e+00 : f32
    %171 = vector.broadcast %cst_38 : f32 to vector<1x32xf32>
    %172 = arith.subf %170, %171 : vector<1x32xf32>
    %173 = vector.extract_strided_slice %165 {offsets = [0, 96], sizes = [1, 32], strides = [1, 1]} : vector<1x128xf32> to vector<1x32xf32>
    %174 = arith.mulf %167, %155 : vector<1x32xf32>
    %175 = arith.mulf %166, %172 : vector<1x32xf32>
    %176 = arith.addf %174, %175 : vector<1x32xf32>
    %177 = math.tanh %176 : vector<1x32xf32>
    %178 = arith.mulf %173, %177 : vector<1x32xf32>
    %179 = tpu.concatenate %31, %52, %73, %94, %115, %136, %157, %178 in 0 : vector<1x32xf32>, vector<1x32xf32>, vector<1x32xf32>, vector<1x32xf32>, vector<1x32xf32>, vector<1x32xf32>, vector<1x32xf32>, vector<1x32xf32> -> vector<8x32xf32>
    %c0_39 = arith.constant 0 : index
    %c0_40 = arith.constant 0 : index
    %180 = vector.load %arg4[%c0_39, %c0_40] : memref<32x128xf32, #tpu.memory_space<vmem>>, vector<32x128xf32>
    %cst_41 = arith.constant dense<0.000000e+00> : vector<8x128xf32>
    %181 = tpu.matmul %179, %180, %cst_41 {dimension_numbers = #tpu.dot_dimension_numbers<[1], [0], [0], [1], [0, 0, 1, 1], [], []>} : vector<8x32xf32>, vector<32x128xf32>, vector<8x128xf32> -> vector<8x128xf32>
    %c0_42 = arith.constant 0 : index
    %c0_43 = arith.constant 0 : index
    %182 = vector.load %arg5[%c0_42, %c0_43] : memref<1x128xf32, #tpu.memory_space<vmem>>, vector<1x128xf32>
    %183 = vector.broadcast %182 : vector<1x128xf32> to vector<8x128xf32>
    %184 = arith.addf %181, %183 : vector<8x128xf32>
    %cst_44 = arith.constant dense<0xFF800000> : vector<8xf32>
    %185 = vector.multi_reduction <maximumf>, %184, %cst_44 [1] : vector<8x128xf32> to vector<8xf32>
    %186 = vector.shape_cast %185 : vector<8xf32> to vector<8x1xf32>
    %187 = vector.broadcast %186 : vector<8x1xf32> to vector<8x128xf32>
    %188 = arith.subf %184, %187 : vector<8x128xf32>
    %189 = math.exp %188 : vector<8x128xf32>
    %cst_45 = arith.constant dense<0.000000e+00> : vector<8xf32>
    %190 = vector.multi_reduction <add>, %189, %cst_45 [1] : vector<8x128xf32> to vector<8xf32>
    %191 = vector.shape_cast %190 : vector<8xf32> to vector<8x1xf32>
    %192 = math.log %191 : vector<8x1xf32>
    %193 = arith.addf %186, %192 : vector<8x1xf32>
    %194 = vector.broadcast %193 : vector<8x1xf32> to vector<8x128xf32>
    %195 = arith.subf %184, %194 : vector<8x128xf32>
    %c0_46 = arith.constant 0 : index
    %c0_47 = arith.constant 0 : index
    %196 = vector.load %arg6[%c0_46, %c0_47] : memref<8x128xf32, #tpu.memory_space<vmem>>, vector<8x128xf32>
    tpu.vector_store %arg6[%c0_46, %c0_47], %195 {strides = array<i32>} : memref<8x128xf32, #tpu.memory_space<vmem>>, vector<8x128xf32>,
    return
  }
  func.func @transform_0(%arg0: i32) -> (i32, i32) {
    %c0_i32 = arith.constant 0 : i32
    %c0_i32_0 = arith.constant 0 : i32
    %c0_i32_1 = arith.constant 0 : i32
    return %c0_i32, %c0_i32_0 : i32, i32
  }
  func.func @transform_1(%arg0: i32) -> (i32, i32) {
    %c0_i32 = arith.constant 0 : i32
    %c0_i32_0 = arith.constant 0 : i32
    %c0_i32_1 = arith.constant 0 : i32
    return %c0_i32, %c0_i32_0 : i32, i32
  }
  func.func @transform_2(%arg0: i32) -> (i32, i32) {
    %c0_i32 = arith.constant 0 : i32
    %c0_i32_0 = arith.constant 0 : i32
    %c0_i32_1 = arith.constant 0 : i32
    return %c0_i32, %c0_i32_0 : i32, i32
  }
  func.func @transform_3(%arg0: i32) -> (i32, i32) {
    %c0_i32 = arith.constant 0 : i32
    %c0_i32_0 = arith.constant 0 : i32
    %c0_i32_1 = arith.constant 0 : i32
    return %c0_i32, %c0_i32_0 : i32, i32
  }
  func.func @transform_4(%arg0: i32) -> (i32, i32) {
    %c0_i32 = arith.constant 0 : i32
    %c0_i32_0 = arith.constant 0 : i32
    %c0_i32_1 = arith.constant 0 : i32
    return %c0_i32, %c0_i32_0 : i32, i32
  }
  func.func @transform_5(%arg0: i32) -> (i32, i32) {
    %c0_i32 = arith.constant 0 : i32
    %c0_i32_0 = arith.constant 0 : i32
    %c0_i32_1 = arith.constant 0 : i32
    return %c0_i32, %c0_i32_0 : i32, i32
  }
}

</mosaic_0001>

<bundles_post_ra>
// kernel: tpu_custom_call.1
= control target key start
LH: loop header
LB: loop body
LE: loop exit
PB: predicated region body
PF: predicated region fallthrough
CT: control target
= control target key end

     0   :  { %10 = vsyncpa [#allocation3], 0  ;;  %s1054_s0 = inlined_call_operand.vmem [shape: s32[8,1], index: 0, kind: input, shape index: {}]   ;;  %s1055_s1 = inlined_call_operand.hbm [shape: f32[20,128], index: 1, kind: input, shape index: {}]   ;;  %s1056_s2 = inlined_call_operand.hbm [shape: f32[32,128], index: 2, kind: input, shape index: {}]   ;;  %s1057_s3 = inlined_call_operand.hbm [shape: f32[32,128], index: 3, kind: input, shape index: {}]   ;;  %s1058_s4 = inlined_call_operand.vmem [shape: f32[1,128], index: 4, kind: input, shape index: {}]   ;;  %s1059_s5 = inlined_call_operand.hbm [shape: f32[8,128], index: 5, kind: output, shape index: {}]  }
   0x1   :  { %11 = vsyncpa [#allocation6], 0 }
   0x2   :  { %12 = vsyncpa [#allocation4], 0  ;;  %s32_s20 = sshll.u32 %s1056_s2, 4  ;;  %s940_s21 = smov [#allocation5]   ;;  %s33_s20 = int_to_ptr.hbm [resolvable:$true] %s32_s20 }
   0x3   :  { %s34_s22 = sshll.u32 %s940_s21, 4  ;;  %s19_s25 = sshll.u32 %s1055_s1, 4  ;;  %s35_s22 = int_to_ptr.vmem [resolvable:$true] %s34_s22  ;;  %s20_s25 = int_to_ptr.hbm [resolvable:$true] %s19_s25 }
   0x4   :  { %s941_s26 = smov 128   ;;  %s942_s27 = smov 8  }
   0x5   :  { %40 = dma.hbm_to_vmem [thread:$0]  %s33_s20, 512, %s35_s22, [#allocation6], %s941_s26, %s941_s26, %s942_s27  }
   0x6   :  { %s943_s28 = smov [#allocation2]   ;;  %s45_s7 = sshll.u32 %s1057_s3, 4  ;;  %s46_s7 = int_to_ptr.hbm [resolvable:$true] %s45_s7 }
   0x7   :  { %s21_s29 = sshll.u32 %s943_s28, 4  ;;  %s944_s2 = smov [#allocation7]   ;;  %s22_s29 = int_to_ptr.vmem [resolvable:$true] %s21_s29 }
   0x8   :  { %27 = dma.hbm_to_vmem [thread:$0]  %s20_s25, 384, %s22_s29, [#allocation3], %s941_s26, %s941_s26, %s942_s27  }
   0x9   :  { %s47_s8 = sshll.u32 %s944_s2, 4  ;;  %s48_s8 = int_to_ptr.vmem [resolvable:$true] %s47_s8 }
   0xa   :  { %53 = dma.hbm_to_vmem [thread:$0]  %s46_s7, 512, %s48_s8, [#allocation6], %s941_s26, %s941_s26, %s942_s27  }
   0xb   :  { %934 = dma.done.wait [#allocation3], 384  }
   0xc   :  { %935 = vsyncadd [#allocation3], 4294966912 }
   0xd   :  { %936 = dma.done.wait [#allocation6], 1024  }
   0xe   :  { %937 = vsyncadd [#allocation6], 4294966272  ;;  %v945_v0 = vmov 0   ;;  %vm84_vm0 = vcmask 1043456   ;;  %v70_v1 = vld [vmem:[%s1054_s0] sm:$0xff]  ;;  %v111_v2 = vld [vmem:[#allocation5 + $0x18] sm:$0xff]  ;;  %v68_v10 = vlaneseq }
   0xf   :  { %784 = vset.pattern.permute.xlu0 %v945_v0  ;;  %v79_v3 = vld [vmem:[#allocation2 + $0x10] sm:$0xf]  ;;  %128 = vmatpush.msra.mxu1 %v111_v2  ;;  %v110_v4 = vld [vmem:[#allocation5 + $0x10] sm:$0xff]  ;;  %v109_v6 = vld [vmem:[#allocation5 + $0x8] sm:$0xff]  ;;  %v946_v9 = vmov 0.0   ;;  %vm80_vm1 = vcmask 162816  }
  0x10   :  { %72 = vperm.xlu0 %784, %v70_v1   ;;  %v78_v5 = vld [vmem:[#allocation2 + $0x8] sm:$0xff]  ;;  %748 = vmatpush.msk.msra.mxu0 %vm84_vm0, %v79_v3  ;;  %v77_v7 = vld [vmem:[#allocation2] sm:$0xff]  ;;  %v108_v8 = vld [vmem:[#allocation5] sm:$0xff]  ;;  %v69_v11 = vand.u32 127, %v68_v10  ;;  %s947_s0 = smov 64   ;;  %s948_s3 = smov 32  }
  0x11   :  { %192 = vmatpush.msra.mxu2 %v111_v2  ;;  %129 = vmatpush.msra.mxu1 %v110_v4  ;;  %vm112_vm7 = vcmask 261120   ;;  %s949_s12 = smov [#allocation8]   ;;  %s736_s16 = sshll.u32 %s1059_s5, 4  ;;  %s737_s16 = int_to_ptr.hbm [resolvable:$true] %s736_s16 }
  0x12   :  { %263 = vmatpush.msra.mxu3 %v111_v2  ;;  %102 = vmatpush.msra.mxu0 %v78_v5  ;;  %s734_s13 = sshll.u32 %s949_s12, 4  ;;  %s735_s13 = int_to_ptr.vmem [resolvable:$true] %s734_s13 }
  0x13   :  { %193 = vmatpush.msra.mxu2 %v110_v4  ;;  %130 = vmatpush.msra.mxu1 %v109_v6 }
  0x14   :  { %264 = vmatpush.msra.mxu3 %v110_v4  ;;  %103 = vmatpush.msra.mxu0 %v77_v7 }
  0x15   :  { %194 = vmatpush.msra.mxu2 %v109_v6  ;;  %131 = vmatpush.msra.mxu1 %v108_v8 }
  0x16   :  { %265 = vmatpush.msra.mxu3 %v109_v6  ;;  %132 = vmatmul.f32.vlgmr.msra.gmra.mxu1 %v946_v9 }
  0x17   :  { %195 = vmatpush.msra.mxu2 %v108_v8  ;;  %334 = vmatpush.msrb.mxu0 %v111_v2 }
  0x18   :  { %266 = vmatpush.msra.mxu3 %v108_v8  ;;  %405 = vmatpush.msrb.mxu1 %v111_v2 }
  0x19   :  { %476 = vmatpush.msrb.mxu2 %v111_v2  ;;  %335 = vmatpush.msrb.mxu0 %v110_v4 }
  0x1a   :  { %547 = vmatpush.msrb.mxu3 %v111_v2  ;;  %406 = vmatpush.msrb.mxu1 %v110_v4 }
  0x1b   :  { %477 = vmatpush.msrb.mxu2 %v110_v4  ;;  %336 = vmatpush.msrb.mxu0 %v109_v6 }
  0x1c   :  { %548 = vmatpush.msrb.mxu3 %v110_v4  ;;  %407 = vmatpush.msrb.mxu1 %v109_v6 }
  0x1d   :  { %478 = vmatpush.msrb.mxu2 %v109_v6  ;;  %337 = vmatpush.msrb.mxu0 %v108_v8 }
  0x1e   :  { %549 = vmatpush.msrb.mxu3 %v109_v6  ;;  %408 = vmatpush.msrb.mxu1 %v108_v8 }
  0x1f   :  { %479 = vmatpush.msrb.mxu2 %v108_v8 }
  0x20   :  { %550 = vmatpush.msrb.mxu3 %v108_v8 }
  0x82   :  { %v73_v12 = vpop.permute.xlu0 %72 }
  0x83   :  { %vm74_vm2 = vcmp.eq.s32.totalorder %v73_v12, %v69_v11 }
  0x84   :  { %v747_v13 = vsel %vm74_vm2, 1.0, %v946_v9  ;;  %vm673_vm2 = vcmask 1041408  }
  0x85   :  { %749 = vmatmul.msk.f32.vlgmr.msra.gmra.mxu0 %vm80_vm1, %v747_v13  ;;  %vm671_vm1 = vcmask 1040384  }
  0x86   :  { %618 = vmatpush.msra.mxu0 %v111_v2 }
  0x88   :  { %619 = vmatpush.msra.mxu0 %v110_v4 }
  0x8a   :  { %620 = vmatpush.msra.mxu0 %v109_v6 }
  0x8c   :  { %621 = vmatpush.msra.mxu0 %v108_v8 }
  0x93   :  { %v133_v14 = vpop.f32.mrf.mxu1 }
 0x102   :  { %v993_v15 = vpop.f32.mrf.mxu0 }
 0x103   :  { %v136_v16 = vadd.f32 %v133_v14, %v993_v15 }
 0x105   :  { %v750_v17 = vmul.f32 -1.442695, %v136_v16 }
 0x107   :  { %786 = vpow2.f32 %v750_v17 }
 0x10d   :  { %v787_v18 = vpop.eup %786 }
 0x10e   :  { %v140_v19 = vadd.f32 1.0, %v787_v18 }
 0x110   :  { %788 = vrcp.f32 %v140_v19  ;;  %v152_v23 = vand.u32 2147483648, %v140_v19  ;;  %v150_v25 = vand.u32 2147483647, %v140_v19  ;;  %vm146_vm4 = vweird.f32 %v140_v19 }
 0x112   :  { %v153_v27 = vor.u32 1.1754944e-38, %v152_v23  ;;  %vm151_vm6 = vcmp.eq.f32.partialorder %v150_v25, 8.507059e+37 }
 0x116   :  { %v789_v20 = vpop.eup %788 }
 0x117   :  { %v142_v21 = vmul.f32 %v789_v20, %v140_v19  ;;  %vm147_vm3 = vweird.f32 %v789_v20 }
 0x118   :  { %vm148_vm5 = vmor %vm146_vm4, %vm147_vm3 }
 0x119   :  { %v143_v22 = vsub.f32 1.0, %v142_v21 }
 0x11b   :  { %v144_v24 = vmul.f32 %v789_v20, %v143_v22 }
 0x11d   :  { %v145_v26 = vadd.f32 %v789_v20, %v144_v24 }
 0x11f   :  { %v149_v28 = vsel %vm148_vm5, %v789_v20, %v145_v26 }
 0x120   :  { %v154_v29 = vsel %vm151_vm6, %v153_v27, %v149_v28 }
 0x121   :  { %v156_v30 = vmul.f32 2.0, %v154_v29  ;;  %v158_v34 = vmul.f32 0.0, %v154_v29 }
 0x123   :  { %v751_v31 = vadd.f32 -1.0, %v156_v30 }
 0x125   :  { %160 = vrot.lane.b32.xlu0 %v751_v31, %s947_s0 }
 0x197   :  { %v161_v32 = vpop.permute.xlu0 %160 }
 0x198   :  { %v163_v33 = vmul.f32 %v161_v32, %v154_v29 }
 0x19a   :  { %165 = vrot.lane.b32.xlu1 %v163_v33, %s948_s3 }
 0x20c   :  { %v166_v35 = vpop.permute.xlu1 %165 }
 0x20d   :  { %v168_v36 = vadd.f32 %v166_v35, %v158_v34 }
 0x20f   :  { %790 = vtanh.f32 %v168_v36  ;;  %v226_v61 = vrot.slane %v168_v36, 7 }
 0x215   :  { %v791_v37 = vpop.eup %790 }
 0x216   :  { %171 = vrot.lane.b32.xlu1 %v791_v37, %s947_s0 }
 0x288   :  { %v172_v38 = vpop.permute.xlu1 %171 }
 0x289   :  { %v999_v39 = vmul.f32 %v172_v38, %v154_v29 }
 0x28b   :  { %176 = vrot.lane.b32.xlu2 %v999_v39, %s948_s3 }
 0x2e5   :  { %v177_v40 = vpop.permute.xlu2 %176 }
 0x2e6   :  { %752 = vmatmul.msk.f32.vlgmr.msra.gmra.mxu2 %vm112_vm7, %v177_v40 }
 0x369   :  { %v197_v41 = vpop.f32.mrf.mxu2 }
 0x36a   :  { %v201_v42 = vrot.slane %v197_v41, 7 }
 0x36c   :  { %v203_v43 = vadd.f32 %v201_v42, %v993_v15 }
 0x36e   :  { %v753_v44 = vmul.f32 -1.442695, %v203_v43 }
 0x370   :  { %792 = vpow2.f32 %v753_v44 }
 0x376   :  { %v793_v45 = vpop.eup %792 }
 0x377   :  { %v207_v46 = vadd.f32 1.0, %v793_v45 }
 0x379   :  { %794 = vrcp.f32 %v207_v46  ;;  %v219_v50 = vand.u32 2147483648, %v207_v46  ;;  %v217_v52 = vand.u32 2147483647, %v207_v46  ;;  %vm213_vm9 = vweird.f32 %v207_v46 }
 0x37b   :  { %v220_v54 = vor.u32 1.1754944e-38, %v219_v50  ;;  %vm218_vm11 = vcmp.eq.f32.partialorder %v217_v52, 8.507059e+37 }
 0x37f   :  { %v795_v47 = vpop.eup %794 }
 0x380   :  { %v209_v48 = vmul.f32 %v795_v47, %v207_v46  ;;  %vm214_vm8 = vweird.f32 %v795_v47 }
 0x381   :  { %vm215_vm10 = vmor %vm213_vm9, %vm214_vm8  ;;  %vm675_vm8 = vcmask 1042432  }
 0x382   :  { %v210_v49 = vsub.f32 1.0, %v209_v48 }
 0x384   :  { %v211_v51 = vmul.f32 %v795_v47, %v210_v49 }
 0x386   :  { %v212_v53 = vadd.f32 %v795_v47, %v211_v51 }
 0x388   :  { %v216_v55 = vsel %vm215_vm10, %v795_v47, %v212_v53 }
 0x389   :  { %v221_v56 = vsel %vm218_vm11, %v220_v54, %v216_v55 }
 0x38a   :  { %v223_v57 = vmul.f32 2.0, %v221_v56  ;;  %v228_v62 = vmul.f32 %v226_v61, %v221_v56 }
 0x38c   :  { %v754_v58 = vadd.f32 -1.0, %v223_v57 }
 0x38e   :  { %230 = vrot.lane.b32.xlu2 %v754_v58, %s947_s0 }
 0x3e8   :  { %v231_v59 = vpop.permute.xlu2 %230 }
 0x3e9   :  { %v233_v60 = vmul.f32 %v231_v59, %v221_v56 }
 0x3eb   :  { %235 = vrot.lane.b32.xlu0 %v233_v60, %s948_s3 }
 0x45d   :  { %v236_v63 = vpop.permute.xlu0 %235 }
 0x45e   :  { %v238_v0 = vadd.f32 %v236_v63, %v228_v62 }
 0x460   :  { %796 = vtanh.f32 %v238_v0  ;;  %v297_v27 = vrot.slane %v238_v0, 7 }
 0x466   :  { %v797_v1 = vpop.eup %796 }
 0x467   :  { %241 = vrot.lane.b32.xlu1 %v797_v1, %s947_s0 }
 0x4d9   :  { %v242_v2 = vpop.permute.xlu1 %241 }
 0x4da   :  { %v244_v3 = vmul.f32 %v242_v2, %v221_v56 }
 0x4dc   :  { %v246_v4 = vrot.slane %v244_v3, 1  ;;  %v672_v34 = vsel %vm671_vm1, %v999_v39, %v244_v3  ;;  %vm678_vm1 = vcmask 1044480  }
 0x4de   :  { %247 = vrot.lane.b32.xlu2 %v246_v4, %s948_s3 }
 0x538   :  { %v248_v5 = vpop.permute.xlu2 %247 }
 0x539   :  { %755 = vmatmul.msk.f32.vlgmr.msra.gmra.mxu3 %vm112_vm7, %v248_v5 }
 0x5bc   :  { %v268_v6 = vpop.f32.mrf.mxu3 }
 0x5bd   :  { %v272_v7 = vrot.slane %v268_v6, 6 }
 0x5bf   :  { %v274_v8 = vadd.f32 %v272_v7, %v993_v15 }
 0x5c1   :  { %v756_v9 = vmul.f32 -1.442695, %v274_v8 }
 0x5c3   :  { %798 = vpow2.f32 %v756_v9 }
 0x5c9   :  { %v799_v10 = vpop.eup %798 }
 0x5ca   :  { %v278_v11 = vadd.f32 1.0, %v799_v10 }
 0x5cc   :  { %800 = vrcp.f32 %v278_v11  ;;  %v290_v16 = vand.u32 2147483648, %v278_v11  ;;  %v288_v18 = vand.u32 2147483647, %v278_v11  ;;  %vm284_vm13 = vweird.f32 %v278_v11 }
 0x5ce   :  { %v291_v20 = vor.u32 1.1754944e-38, %v290_v16  ;;  %vm289_vm15 = vcmp.eq.f32.partialorder %v288_v18, 8.507059e+37 }
 0x5d2   :  { %v801_v12 = vpop.eup %800 }
 0x5d3   :  { %v280_v13 = vmul.f32 %v801_v12, %v278_v11  ;;  %vm285_vm12 = vweird.f32 %v801_v12 }
 0x5d4   :  { %vm286_vm14 = vmor %vm284_vm13, %vm285_vm12 }
 0x5d5   :  { %v281_v14 = vsub.f32 1.0, %v280_v13 }
 0x5d7   :  { %v282_v17 = vmul.f32 %v801_v12, %v281_v14 }
 0x5d9   :  { %v283_v19 = vadd.f32 %v801_v12, %v282_v17 }
 0x5db   :  { %v287_v21 = vsel %vm286_vm14, %v801_v12, %v283_v19 }
 0x5dc   :  { %v292_v22 = vsel %vm289_vm15, %v291_v20, %v287_v21 }
 0x5dd   :  { %v294_v23 = vmul.f32 2.0, %v292_v22  ;;  %v299_v28 = vmul.f32 %v297_v27, %v292_v22 }
 0x5df   :  { %v757_v24 = vadd.f32 -1.0, %v294_v23 }
 0x5e1   :  { %301 = vrot.lane.b32.xlu0 %v757_v24, %s947_s0 }
 0x653   :  { %v302_v25 = vpop.permute.xlu0 %301 }
 0x654   :  { %v304_v26 = vmul.f32 %v302_v25, %v292_v22 }
 0x656   :  { %306 = vrot.lane.b32.xlu1 %v304_v26, %s948_s3 }
 0x6c8   :  { %v307_v29 = vpop.permute.xlu1 %306 }
 0x6c9   :  { %v309_v30 = vadd.f32 %v307_v29, %v299_v28 }
 0x6cb   :  { %802 = vtanh.f32 %v309_v30  ;;  %v368_v58 = vrot.slane %v309_v30, 7 }
 0x6d1   :  { %v803_v31 = vpop.eup %802 }
 0x6d2   :  { %312 = vrot.lane.b32.xlu2 %v803_v31, %s947_s0 }
 0x72c   :  { %v313_v32 = vpop.permute.xlu2 %312 }
 0x72d   :  { %v315_v33 = vmul.f32 %v313_v32, %v292_v22 }
 0x72f   :  { %v317_v35 = vrot.slane %v315_v33, 2  ;;  %v674_v36 = vsel %vm673_vm2, %v672_v34, %v315_v33 }
 0x731   :  { %318 = vrot.lane.b32.xlu0 %v317_v35, %s948_s3 }
 0x7a3   :  { %v319_v37 = vpop.permute.xlu0 %318 }
 0x7a4   :  { %758 = vmatmul.msk.f32.vlgmr.msrb.gmra.mxu0 %vm112_vm7, %v319_v37 }
 0x821   :  { %v339_v38 = vpop.f32.mrf.mxu0 }
 0x822   :  { %v343_v40 = vrot.slane %v339_v38, 5 }
 0x824   :  { %v345_v41 = vadd.f32 %v343_v40, %v993_v15 }
 0x826   :  { %v759_v42 = vmul.f32 -1.442695, %v345_v41 }
 0x828   :  { %804 = vpow2.f32 %v759_v42 }
 0x82e   :  { %v805_v43 = vpop.eup %804 }
 0x82f   :  { %v349_v44 = vadd.f32 1.0, %v805_v43 }
 0x831   :  { %806 = vrcp.f32 %v349_v44  ;;  %v361_v39 = vand.u32 2147483648, %v349_v44  ;;  %v359_v49 = vand.u32 2147483647, %v349_v44  ;;  %vm355_vm4 = vweird.f32 %v349_v44 }
 0x833   :  { %v362_v51 = vor.u32 1.1754944e-38, %v361_v39  ;;  %vm360_vm6 = vcmp.eq.f32.partialorder %v359_v49, 8.507059e+37 }
 0x837   :  { %v807_v45 = vpop.eup %806 }
 0x838   :  { %v351_v46 = vmul.f32 %v807_v45, %v349_v44  ;;  %vm356_vm3 = vweird.f32 %v807_v45 }
 0x839   :  { %vm357_vm5 = vmor %vm355_vm4, %vm356_vm3 }
 0x83a   :  { %v352_v47 = vsub.f32 1.0, %v351_v46 }
 0x83c   :  { %v353_v48 = vmul.f32 %v807_v45, %v352_v47 }
 0x83e   :  { %v354_v50 = vadd.f32 %v807_v45, %v353_v48 }
 0x840   :  { %v358_v52 = vsel %vm357_vm5, %v807_v45, %v354_v50 }
 0x841   :  { %v363_v53 = vsel %vm360_vm6, %v362_v51, %v358_v52  ;;  %vm680_vm6 = vcmask 1045504  }
 0x842   :  { %v365_v54 = vmul.f32 2.0, %v363_v53  ;;  %v370_v59 = vmul.f32 %v368_v58, %v363_v53 }
 0x844   :  { %v760_v55 = vadd.f32 -1.0, %v365_v54 }
 0x846   :  { %372 = vrot.lane.b32.xlu1 %v760_v55, %s947_s0 }
 0x8b8   :  { %v373_v56 = vpop.permute.xlu1 %372 }
 0x8b9   :  { %v375_v57 = vmul.f32 %v373_v56, %v363_v53 }
 0x8bb   :  { %377 = vrot.lane.b32.xlu2 %v375_v57, %s948_s3 }
 0x915   :  { %v378_v60 = vpop.permute.xlu2 %377 }
 0x916   :  { %v380_v61 = vadd.f32 %v378_v60, %v370_v59 }
 0x918   :  { %808 = vtanh.f32 %v380_v61  ;;  %v439_v25 = vrot.slane %v380_v61, 7 }
 0x91e   :  { %v809_v62 = vpop.eup %808 }
 0x91f   :  { %383 = vrot.lane.b32.xlu0 %v809_v62, %s947_s0 }
 0x991   :  { %v384_v63 = vpop.permute.xlu0 %383 }
 0x992   :  { %v386_v0 = vmul.f32 %v384_v63, %v363_v53 }
 0x994   :  { %v388_v1 = vrot.slane %v386_v0, 3  ;;  %v676_v2 = vsel %vm675_vm8, %v674_v36, %v386_v0 }
 0x996   :  { %389 = vrot.lane.b32.xlu1 %v388_v1, %s948_s3 }
 0xa08   :  { %v390_v3 = vpop.permute.xlu1 %389 }
 0xa09   :  { %761 = vmatmul.msk.f32.vlgmr.msrb.gmra.mxu1 %vm112_vm7, %v390_v3 }
 0xa86   :  { %v410_v4 = vpop.f32.mrf.mxu1 }
 0xa87   :  { %v414_v5 = vrot.slane %v410_v4, 4 }
 0xa89   :  { %v416_v6 = vadd.f32 %v414_v5, %v993_v15 }
 0xa8b   :  { %v762_v7 = vmul.f32 -1.442695, %v416_v6 }
 0xa8d   :  { %810 = vpow2.f32 %v762_v7 }
 0xa93   :  { %v811_v8 = vpop.eup %810 }
 0xa94   :  { %v420_v9 = vadd.f32 1.0, %v811_v8 }
 0xa96   :  { %812 = vrcp.f32 %v420_v9  ;;  %v432_v13 = vand.u32 2147483648, %v420_v9  ;;  %v430_v16 = vand.u32 2147483647, %v420_v9  ;;  %vm426_vm10 = vweird.f32 %v420_v9 }
 0xa98   :  { %v433_v18 = vor.u32 1.1754944e-38, %v432_v13  ;;  %vm431_vm12 = vcmp.eq.f32.partialorder %v430_v16, 8.507059e+37 }
 0xa9c   :  { %v813_v10 = vpop.eup %812 }
 0xa9d   :  { %v422_v11 = vmul.f32 %v813_v10, %v420_v9  ;;  %vm427_vm9 = vweird.f32 %v813_v10 }
 0xa9e   :  { %vm428_vm11 = vmor %vm426_vm10, %vm427_vm9 }
 0xa9f   :  { %v423_v12 = vsub.f32 1.0, %v422_v11 }
 0xaa1   :  { %v424_v14 = vmul.f32 %v813_v10, %v423_v12 }
 0xaa3   :  { %v425_v17 = vadd.f32 %v813_v10, %v424_v14 }
 0xaa5   :  { %v429_v19 = vsel %vm428_vm11, %v813_v10, %v425_v17 }
 0xaa6   :  { %v434_v20 = vsel %vm431_vm12, %v433_v18, %v429_v19  ;;  %vm682_vm12 = vcmask 1046528  }
 0xaa7   :  { %v436_v21 = vmul.f32 2.0, %v434_v20  ;;  %v441_v26 = vmul.f32 %v439_v25, %v434_v20 }
 0xaa9   :  { %v763_v22 = vadd.f32 -1.0, %v436_v21 }
 0xaab   :  { %443 = vrot.lane.b32.xlu2 %v763_v22, %s947_s0 }
 0xb05   :  { %v444_v23 = vpop.permute.xlu2 %443 }
 0xb06   :  { %v446_v24 = vmul.f32 %v444_v23, %v434_v20 }
 0xb08   :  { %448 = vrot.lane.b32.xlu0 %v446_v24, %s948_s3 }
 0xb7a   :  { %v449_v27 = vpop.permute.xlu0 %448 }
 0xb7b   :  { %v451_v28 = vadd.f32 %v449_v27, %v441_v26 }
 0xb7d   :  { %814 = vtanh.f32 %v451_v28  ;;  %v510_v55 = vrot.slane %v451_v28, 7 }
 0xb83   :  { %v815_v29 = vpop.eup %814 }
 0xb84   :  { %454 = vrot.lane.b32.xlu1 %v815_v29, %s947_s0 }
 0xbf6   :  { %v455_v30 = vpop.permute.xlu1 %454 }
 0xbf7   :  { %v457_v31 = vmul.f32 %v455_v30, %v434_v20 }
 0xbf9   :  { %v459_v32 = vrot.slane %v457_v31, 4  ;;  %v677_v33 = vsel %vm84_vm0, %v676_v2, %v457_v31 }
 0xbfb   :  { %460 = vrot.lane.b32.xlu2 %v459_v32, %s948_s3 }
 0xc55   :  { %v461_v34 = vpop.permute.xlu2 %460 }
 0xc56   :  { %764 = vmatmul.msk.f32.vlgmr.msrb.gmra.mxu2 %vm112_vm7, %v461_v34 }
 0xcd9   :  { %v481_v35 = vpop.f32.mrf.mxu2 }
 0xcda   :  { %v485_v36 = vrot.slane %v481_v35, 3 }
 0xcdc   :  { %v487_v37 = vadd.f32 %v485_v36, %v993_v15 }
 0xcde   :  { %v765_v38 = vmul.f32 -1.442695, %v487_v37 }
 0xce0   :  { %816 = vpow2.f32 %v765_v38 }
 0xce6   :  { %v817_v40 = vpop.eup %816 }
 0xce7   :  { %v491_v41 = vadd.f32 1.0, %v817_v40 }
 0xce9   :  { %818 = vrcp.f32 %v491_v41  ;;  %v503_v45 = vand.u32 2147483648, %v491_v41  ;;  %v501_v47 = vand.u32 2147483647, %v491_v41  ;;  %vm497_vm13 = vweird.f32 %v491_v41 }
 0xceb   :  { %v504_v48 = vor.u32 1.1754944e-38, %v503_v45  ;;  %vm502_vm15 = vcmp.eq.f32.partialorder %v501_v47, 8.507059e+37 }
 0xcef   :  { %v819_v42 = vpop.eup %818 }
 0xcf0   :  { %v493_v43 = vmul.f32 %v819_v42, %v491_v41  ;;  %vm498_vm0 = vweird.f32 %v819_v42 }
 0xcf1   :  { %vm499_vm14 = vmor %vm497_vm13, %vm498_vm0 }
 0xcf2   :  { %v494_v44 = vsub.f32 1.0, %v493_v43 }
 0xcf4   :  { %v495_v46 = vmul.f32 %v819_v42, %v494_v44 }
 0xcf6   :  { %v496_v39 = vadd.f32 %v819_v42, %v495_v46 }
 0xcf8   :  { %v500_v49 = vsel %vm499_vm14, %v819_v42, %v496_v39 }
 0xcf9   :  { %v505_v50 = vsel %vm502_vm15, %v504_v48, %v500_v49 }
 0xcfa   :  { %v507_v51 = vmul.f32 2.0, %v505_v50  ;;  %v512_v56 = vmul.f32 %v510_v55, %v505_v50 }
 0xcfc   :  { %v766_v52 = vadd.f32 -1.0, %v507_v51 }
 0xcfe   :  { %514 = vrot.lane.b32.xlu0 %v766_v52, %s947_s0 }
 0xd70   :  { %v515_v53 = vpop.permute.xlu0 %514 }
 0xd71   :  { %v517_v54 = vmul.f32 %v515_v53, %v505_v50 }
 0xd73   :  { %519 = vrot.lane.b32.xlu1 %v517_v54, %s948_s3 }
 0xde5   :  { %v520_v57 = vpop.permute.xlu1 %519 }
 0xde6   :  { %v522_v58 = vadd.f32 %v520_v57, %v512_v56  ;;  %v687_v56 = vld [vmem:[#allocation7 + $0x18] sm:$0xff]  ;;  %v686_v57 = vld [vmem:[#allocation7 + $0x10] sm:$0xff] }
 0xde7   :  { %709 = vmatpush.msra.mxu1 %v687_v56 }
 0xde8   :  { %820 = vtanh.f32 %v522_v58  ;;  %v581_v22 = vrot.slane %v522_v58, 7  ;;  %v685_v58 = vld [vmem:[#allocation7 + $0x8] sm:$0xff] }
 0xde9   :  { %710 = vmatpush.msra.mxu1 %v686_v57 }
 0xdeb   :  { %711 = vmatpush.msra.mxu1 %v685_v58 }
 0xdee   :  { %v821_v59 = vpop.eup %820 }
 0xdef   :  { %525 = vrot.lane.b32.xlu2 %v821_v59, %s947_s0  ;;  %v684_v59 = vld [vmem:[#allocation7] sm:$0xff] }
 0xdf0   :  { %712 = vmatpush.msra.mxu1 %v684_v59 }
 0xe49   :  { %v526_v60 = vpop.permute.xlu2 %525 }
 0xe4a   :  { %v528_v61 = vmul.f32 %v526_v60, %v505_v50 }
 0xe4c   :  { %v530_v62 = vrot.slane %v528_v61, 5  ;;  %v679_v63 = vsel %vm678_vm1, %v677_v33, %v528_v61 }
 0xe4e   :  { %531 = vrot.lane.b32.xlu0 %v530_v62, %s948_s3 }
 0xec0   :  { %v532_v0 = vpop.permute.xlu0 %531 }
 0xec1   :  { %767 = vmatmul.msk.f32.vlgmr.msrb.gmra.mxu3 %vm112_vm7, %v532_v0  ;;  %v785_v0 = vld [vmem:[%s1058_s4] ss:$0 sm:$0xff] }
 0xf44   :  { %v552_v1 = vpop.f32.mrf.mxu3 }
 0xf45   :  { %v556_v2 = vrot.slane %v552_v1, 2 }
 0xf47   :  { %v558_v3 = vadd.f32 %v556_v2, %v993_v15 }
 0xf49   :  { %v768_v4 = vmul.f32 -1.442695, %v558_v3 }
 0xf4b   :  { %822 = vpow2.f32 %v768_v4 }
 0xf51   :  { %v823_v5 = vpop.eup %822 }
 0xf52   :  { %v562_v6 = vadd.f32 1.0, %v823_v5 }
 0xf54   :  { %824 = vrcp.f32 %v562_v6  ;;  %v574_v10 = vand.u32 2147483648, %v562_v6  ;;  %v572_v12 = vand.u32 2147483647, %v562_v6  ;;  %vm568_vm3 = vweird.f32 %v562_v6 }
 0xf56   :  { %v575_v14 = vor.u32 1.1754944e-38, %v574_v10  ;;  %vm573_vm5 = vcmp.eq.f32.partialorder %v572_v12, 8.507059e+37 }
 0xf5a   :  { %v825_v7 = vpop.eup %824 }
 0xf5b   :  { %v564_v8 = vmul.f32 %v825_v7, %v562_v6  ;;  %vm569_vm2 = vweird.f32 %v825_v7 }
 0xf5c   :  { %vm570_vm4 = vmor %vm568_vm3, %vm569_vm2 }
 0xf5d   :  { %v565_v9 = vsub.f32 1.0, %v564_v8 }
 0xf5f   :  { %v566_v11 = vmul.f32 %v825_v7, %v565_v9 }
 0xf61   :  { %v567_v13 = vadd.f32 %v825_v7, %v566_v11 }
 0xf63   :  { %v571_v16 = vsel %vm570_vm4, %v825_v7, %v567_v13 }
 0xf64   :  { %v576_v17 = vsel %vm573_vm5, %v575_v14, %v571_v16 }
 0xf65   :  { %v578_v18 = vmul.f32 2.0, %v576_v17  ;;  %v583_v23 = vmul.f32 %v581_v22, %v576_v17 }
 0xf67   :  { %v769_v19 = vadd.f32 -1.0, %v578_v18 }
 0xf69   :  { %585 = vrot.lane.b32.xlu1 %v769_v19, %s947_s0 }
 0xfdb   :  { %v586_v20 = vpop.permute.xlu1 %585 }
 0xfdc   :  { %v588_v21 = vmul.f32 %v586_v20, %v576_v17 }
 0xfde   :  { %590 = vrot.lane.b32.xlu2 %v588_v21, %s948_s3 }
0x1038   :  { %v591_v24 = vpop.permute.xlu2 %590 }
0x1039   :  { %v593_v25 = vadd.f32 %v591_v24, %v583_v23 }
0x103b   :  { %826 = vtanh.f32 %v593_v25  ;;  %v652_v51 = vrot.slane %v593_v25, 7 }
0x1041   :  { %v827_v26 = vpop.eup %826 }
0x1042   :  { %596 = vrot.lane.b32.xlu0 %v827_v26, %s947_s0 }
0x10b4   :  { %v597_v27 = vpop.permute.xlu0 %596 }
0x10b5   :  { %v599_v28 = vmul.f32 %v597_v27, %v576_v17 }
0x10b7   :  { %v601_v29 = vrot.slane %v599_v28, 6  ;;  %v681_v30 = vsel %vm680_vm6, %v679_v63, %v599_v28 }
0x10b9   :  { %602 = vrot.lane.b32.xlu1 %v601_v29, %s948_s3 }
0x112b   :  { %v603_v31 = vpop.permute.xlu1 %602 }
0x112c   :  { %770 = vmatmul.msk.f32.vlgmr.msra.gmra.mxu0 %vm112_vm7, %v603_v31 }
0x11a9   :  { %v623_v32 = vpop.f32.mrf.mxu0 }
0x11aa   :  { %v627_v33 = vrot.slane %v623_v32, 1 }
0x11ac   :  { %v629_v34 = vadd.f32 %v627_v33, %v993_v15 }
0x11ae   :  { %v771_v35 = vmul.f32 -1.442695, %v629_v34 }
0x11b0   :  { %828 = vpow2.f32 %v771_v35 }
0x11b6   :  { %v829_v36 = vpop.eup %828 }
0x11b7   :  { %v633_v37 = vadd.f32 1.0, %v829_v36 }
0x11b9   :  { %830 = vrcp.f32 %v633_v37  ;;  %v645_v42 = vand.u32 2147483648, %v633_v37  ;;  %v643_v44 = vand.u32 2147483647, %v633_v37  ;;  %vm639_vm9 = vweird.f32 %v633_v37 }
0x11bb   :  { %v646_v46 = vor.u32 1.1754944e-38, %v645_v42  ;;  %vm644_vm11 = vcmp.eq.f32.partialorder %v643_v44, 8.507059e+37 }
0x11bf   :  { %v831_v38 = vpop.eup %830 }
0x11c0   :  { %v635_v40 = vmul.f32 %v831_v38, %v633_v37  ;;  %vm640_vm8 = vweird.f32 %v831_v38 }
0x11c1   :  { %vm641_vm10 = vmor %vm639_vm9, %vm640_vm8 }
0x11c2   :  { %v636_v41 = vsub.f32 1.0, %v635_v40 }
0x11c4   :  { %v637_v43 = vmul.f32 %v831_v38, %v636_v41 }
0x11c6   :  { %v638_v45 = vadd.f32 %v831_v38, %v637_v43 }
0x11c8   :  { %v642_v47 = vsel %vm641_vm10, %v831_v38, %v638_v45 }
0x11c9   :  { %v647_v39 = vsel %vm644_vm11, %v646_v46, %v642_v47 }
0x11ca   :  { %v649_v15 = vmul.f32 2.0, %v647_v39  ;;  %v654_v52 = vmul.f32 %v652_v51, %v647_v39 }
0x11cc   :  { %v772_v48 = vadd.f32 -1.0, %v649_v15 }
0x11ce   :  { %656 = vrot.lane.b32.xlu2 %v772_v48, %s947_s0 }
0x1228   :  { %v657_v49 = vpop.permute.xlu2 %656 }
0x1229   :  { %v659_v50 = vmul.f32 %v657_v49, %v647_v39 }
0x122b   :  { %661 = vrot.lane.b32.xlu0 %v659_v50, %s948_s3 }
0x129d   :  { %v662_v53 = vpop.permute.xlu0 %661 }
0x129e   :  { %v664_v54 = vadd.f32 %v662_v53, %v654_v52 }
0x12a0   :  { %832 = vtanh.f32 %v664_v54 }
0x12a6   :  { %v833_v55 = vpop.eup %832 }
0x12a7   :  { %667 = vrot.lane.b32.xlu1 %v833_v55, %s947_s0 }
0x1319   :  { %v668_v60 = vpop.permute.xlu1 %667 }
0x131a   :  { %v670_v61 = vmul.f32 %v668_v60, %v647_v39 }
0x131c   :  { %v683_v62 = vsel %vm682_vm12, %v681_v30, %v670_v61 }
0x131d   :  { %693 = vrot.lane.b32.xlu2 %v683_v62, %s948_s3 }
0x1377   :  { %v694_v63 = vpop.permute.xlu2 %693 }
0x1378   :  { %773 = vmatmul.msk.f32.vlgmr.msra.gmra.mxu1 %vm112_vm7, %v694_v63 }
0x13f5   :  { %v714_v1 = vpop.f32.mrf.mxu1 }
0x13f6   :  { %v715_v2 = vadd.f32 %v785_v0, %v714_v1 }
0x13f8   :  { %717 = vmax.xlane.f32.xlu0 %v715_v2 }
0x146b   :  { %v718_v3 = vpop.xlane.xlu0 %717 }
0x146c   :  { %v719_v4 = vsub.f32 %v715_v2, %v718_v3 }
0x146e   :  { %v720_v5 = vmul.f32 1.442695, %v719_v4 }
0x1470   :  { %834 = vpow2.f32 %v720_v5 }
0x1476   :  { %v835_v6 = vpop.eup %834 }
0x1477   :  { %722 = vadd.xlane.f32.xlu1 %v835_v6 }
0x14ea   :  { %v723_v7 = vpop.xlane.xlu1 %722 }
0x14eb   :  { %836 = vlog2.f32 %v723_v7 }
0x14f1   :  { %v837_v8 = vpop.eup %836 }
0x14f2   :  { %v725_v9 = vmul.f32 0.6931472, %v837_v8 }
0x14f4   :  { %v726_v10 = vadd.f32 %v725_v9, %v718_v3 }
0x14f6   :  { %v727_v11 = vsub.f32 %v715_v2, %v726_v10 }
0x14f8   :  { %728 = vst [vmem:[#allocation8] sm:$0xff] %v727_v11 }
0x14f9   :  { %739 = dma.vmem_to_hbm [thread:$0]  %s735_s13, 128, %s737_s16, [#allocation4]  }
0x14fa   :  { %938 = dma.done.wait [#allocation4], 128  }
0x14fb   :  { %939 = vsyncadd [#allocation4], 4294967168 }
0x14fc   :  { %744 = vsyncpa [#allocation3], 1 }
0x14fd   :  { %745 = vsyncpa [#allocation6], 1 }
0x14fe   :  { %746 = vsyncpa [#allocation4], 1 }

</bundles_post_ra>
